<compile_context>
chip_gen: v5e
topology: v5e:2x2
jax: 0.10.0
libtpu: 0.0.40
codegen_flags: <defaults>
</compile_context>

<pallas_src>
import math

import jax
import jax.numpy as jnp
from jax import lax
from jax.experimental import pallas as pl
from jax.experimental.pallas import tpu as pltpu


def _round_up(n: int, mult: int) -> int:
    return ((n + mult - 1) // mult) * mult


def _make_add_margin_kernel(s: float, m: float, matmul_dtype):
    s = float(s)
    s_m = float(s) * float(m)
    eps_sq = 1e-24  # (1e-12)^2 -> matches F.normalize's max(||v||, 1e-12) clamp

    def kernel(x_ref, wt_ref, label_ref, out_ref):
        x = x_ref[...]          # (TB, D)  float32
        wt = wt_ref[...]        # (D, TC)  float32

        # Inverse L2 norms via rsqrt (EUP slot). Applied as a cheap (TB,TC) post-scale
        # instead of dividing the large operands elementwise before the matmul.
        inv_x = lax.rsqrt(jnp.maximum(jnp.sum(x * x, axis=1, keepdims=True),
                                      jnp.float32(eps_sq)))            # (TB, 1)
        inv_w = lax.rsqrt(jnp.maximum(jnp.sum(wt * wt, axis=0, keepdims=True),
                                      jnp.float32(eps_sq)))            # (1, TC)

        if matmul_dtype is not None:
            a = x.astype(matmul_dtype)
            b = wt.astype(matmul_dtype)
        else:
            a, b = x, wt
        raw = jnp.dot(a, b, preferred_element_type=jnp.float32)        # (TB, TC) on MXU

        # out = s * cosine - s*m at each row's label column (global column index!).
        tb, tc = out_ref.shape
        col = pl.program_id(1) * tc + lax.broadcasted_iota(jnp.int32, (tb, tc), 1)
        margin = jnp.where(col == label_ref[...], jnp.float32(s_m), jnp.float32(0.0))
        out_ref[...] = raw * ((jnp.float32(s) * inv_x) * inv_w) - margin

    return kernel


def add_margin_product(x, weight, label, s=30.0, m=0.4, *,
                       tile_b=256, tile_c=2048, matmul_dtype=None,
                       vmem_limit_bytes=64 * 1024 * 1024):
    """x: (B, D) f32, weight: (C, D) f32 (nn.Linear layout), label: (B,) int -> (B, C) f32."""
    B, D = x.shape
    C, D_w = weight.shape
    assert D_w == D, "weight must be (out_features, in_features)"

    # Pre-transpose weight once so the kernel contracts x's last axis against W^T's
    # first axis (no per-tile transpose, lane-dense along C for weights and output).
    w_t = weight.T                                         # (D, C)

    # Tile sizes obeying the (8, 128) TPU tiling constraint; pad arrays to full tiles.
    tb = min(int(tile_b), _round_up(B, 8))
    tc = min(int(tile_c), _round_up(C, 128))
    b_pad = _round_up(B, tb)
    c_pad = _round_up(C, tc)

    label = jnp.asarray(label)
    if b_pad != B:
        x = jnp.pad(x, ((0, b_pad - B), (0, 0)))
        label = jnp.pad(label, ((0, b_pad - B),), constant_values=-1)  # never matches
    if c_pad != C:
        w_t = jnp.pad(w_t, ((0, 0), (0, c_pad - C)))

    label2d = label.reshape(b_pad, 1).astype(jnp.int32)

    grid = (b_pad // tb, c_pad // tc)
    kernel = _make_add_margin_kernel(s, m, matmul_dtype)

    out = pl.pallas_call(
        kernel,
        out_shape=jax.ShapeDtypeStruct((b_pad, c_pad), jnp.float32),
        grid=grid,
        in_specs=[
            pl.BlockSpec((tb, D), lambda i, j: (i, 0)),    # x: resident across C tiles
            pl.BlockSpec((D, tc), lambda i, j: (0, j)),    # W^T: streamed / double-buffered
            pl.BlockSpec((tb, 1), lambda i, j: (i, 0)),    # labels for this B tile
        ],
        out_specs=pl.BlockSpec((tb, tc), lambda i, j: (i, j)),
        compiler_params=pltpu.CompilerParams(
            dimension_semantics=("parallel", "parallel"),   # megacore-friendly on v7x
            vmem_limit_bytes=int(vmem_limit_bytes),         # raise further on v5e/v6e if desired
        ),
    )(x, w_t, label2d)

    return out[:B, :C]


def _reference(x, weight, label, s, m):
    # Canonical module semantics in plain JAX (full-precision f32 matmul).
    xn = x / jnp.maximum(jnp.linalg.norm(x, axis=-1, keepdims=True), 1e-12)
    wn = weight / jnp.maximum(jnp.linalg.norm(weight, axis=-1, keepdims=True), 1e-12)
    cos = jnp.dot(xn, wn.T, precision=jax.lax.Precision.HIGHEST)
    one_hot = jax.nn.one_hot(label, weight.shape[0], dtype=jnp.float32)
    return s * (one_hot * (cos - m) + (1.0 - one_hot) * cos)


if __name__ == "__main__":
    s_param, m_param = 30.0, 0.4
    key = jax.random.PRNGKey(0)
    kx, kw, kl, kx2, kw2, kl2 = jax.random.split(key, 6)

    # ---- case 1: batch=8, in_features=32, out_features=128 (single-tile grid) ----
    B, D, C = 8, 32, 128
    # bf16-representable f32 inputs so MXU operand rounding is lossless and the check
    # against the full-precision reference stays tight regardless of matmul passes.
    x = jax.random.normal(kx, (B, D), dtype=jnp.float32)
    x = x.astype(jnp.bfloat16).astype(jnp.float32)
    bound = math.sqrt(6.0 / (D + C))                       # xavier_uniform_
    weight = jax.random.uniform(kw, (C, D), jnp.float32, -bound, bound)
    weight = weight.astype(jnp.bfloat16).astype(jnp.float32)
    label = jax.random.randint(kl, (B,), 0, C, dtype=jnp.int32)

    out = jax.block_until_ready(add_margin_product(x, weight, label, s_param, m_param))
    ref = _reference(x, weight, label, s_param, m_param)
    assert out.shape == (B, C) and out.dtype == jnp.float32
    assert jnp.allclose(out, ref, atol=1e-2, rtol=1e-3)

    # bf16 MXU-operand path (v6e/v7x recommendation), f32 accumulation.
    out_bf16 = jax.block_until_ready(
        add_margin_product(x, weight, label, s_param, m_param, matmul_dtype=jnp.bfloat16))
    assert jnp.allclose(out_bf16, ref, atol=5e-2, rtol=1e-2)

    # ---- case 2: non-aligned B/C with a multi-tile grid (exercises padding and the
    #              per-C-tile column offset in the margin select) ----
    B2, D2, C2 = 10, 32, 200
    x2 = jax.random.normal(kx2, (B2, D2), dtype=jnp.float32)
    x2 = x2.astype(jnp.bfloat16).astype(jnp.float32)
    bound2 = math.sqrt(6.0 / (D2 + C2))
    w2 = jax.random.uniform(kw2, (C2, D2), jnp.float32, -bound2, bound2)
    w2 = w2.astype(jnp.bfloat16).astype(jnp.float32)
    label2 = jax.random.randint(kl2, (B2,), 0, C2, dtype=jnp.int32)

    out2 = jax.block_until_ready(
        add_margin_product(x2, w2, label2, s_param, m_param, tile_b=8, tile_c=128))
    ref2 = _reference(x2, w2, label2, s_param, m_param)
    assert out2.shape == (B2, C2) and out2.dtype == jnp.float32
    assert jnp.allclose(out2, ref2, atol=1e-2, rtol=1e-3)

    print("KERNEL_OK")
</pallas_src>

<mosaic_0001>
module attributes {stable_mosaic.version = 11 : i64} {
  func.func @kernel(%arg0: i32, %arg1: i32, %arg2: memref<8x32xf32, #tpu.memory_space<vmem>>, %arg3: memref<32x128xf32, #tpu.memory_space<vmem>>, %arg4: memref<8x1xi32, #tpu.memory_space<vmem>>, %arg5: memref<8x128xf32, #tpu.memory_space<vmem>>) attributes {dimension_semantics = [#tpu.dimension_semantics<parallel>, #tpu.dimension_semantics<parallel>], iteration_bounds = array<i64: 1, 1>, scalar_prefetch = 0 : i64, scratch_operands = 0 : i64, tpu.core_type = #tpu.core_type<tc>, window_params = [{transform_indices = @transform_0, window_bounds = array<i64: 8, 32>}, {transform_indices = @transform_1, window_bounds = array<i64: 32, 128>}, {transform_indices = @transform_2, window_bounds = array<i64: 8, 1>}, {transform_indices = @transform_3, window_bounds = array<i64: 8, 128>}]} {
    %c0 = arith.constant 0 : index
    %c0_0 = arith.constant 0 : index
    %0 = vector.load %arg2[%c0, %c0_0] : memref<8x32xf32, #tpu.memory_space<vmem>>, vector<8x32xf32>
    %c0_1 = arith.constant 0 : index
    %c0_2 = arith.constant 0 : index
    %1 = vector.load %arg3[%c0_1, %c0_2] : memref<32x128xf32, #tpu.memory_space<vmem>>, vector<32x128xf32>
    %2 = arith.mulf %0, %0 : vector<8x32xf32>
    %cst = arith.constant dense<0.000000e+00> : vector<8xf32>
    %3 = vector.multi_reduction <add>, %2, %cst [1] : vector<8x32xf32> to vector<8xf32>
    %4 = vector.shape_cast %3 : vector<8xf32> to vector<8x1xf32>
    %cst_3 = arith.constant 1.000000e-24 : f32
    %5 = vector.broadcast %cst_3 : f32 to vector<8x1xf32>
    %6 = arith.maximumf %4, %5 : vector<8x1xf32>
    %7 = math.rsqrt %6 : vector<8x1xf32>
    %8 = arith.mulf %1, %1 : vector<32x128xf32>
    %cst_4 = arith.constant dense<0.000000e+00> : vector<128xf32>
    %9 = vector.multi_reduction <add>, %8, %cst_4 [0] : vector<32x128xf32> to vector<128xf32>
    %10 = vector.shape_cast %9 : vector<128xf32> to vector<1x128xf32>
    %cst_5 = arith.constant 1.000000e-24 : f32
    %11 = vector.broadcast %cst_5 : f32 to vector<1x128xf32>
    %12 = arith.maximumf %10, %11 : vector<1x128xf32>
    %13 = math.rsqrt %12 : vector<1x128xf32>
    %cst_6 = arith.constant dense<0.000000e+00> : vector<8x128xf32>
    %14 = tpu.matmul %0, %1, %cst_6 {dimension_numbers = #tpu.dot_dimension_numbers<[1], [0], [0], [1], [0, 0, 1, 1], [], []>} : vector<8x32xf32>, vector<32x128xf32>, vector<8x128xf32> -> vector<8x128xf32>
    %c128_i32 = arith.constant 128 : i32
    %15 = arith.muli %arg1, %c128_i32 : i32
    %16 = tpu.iota {dimensions = array<i32: 1>} : vector<8x128xi32>
    %17 = vector.broadcast %15 : i32 to vector<8x128xi32>
    %18 = arith.addi %17, %16 : vector<8x128xi32>
    %c0_7 = arith.constant 0 : index
    %c0_8 = arith.constant 0 : index
    %19 = vector.load %arg4[%c0_7, %c0_8] : memref<8x1xi32, #tpu.memory_space<vmem>>, vector<8x1xi32>
    %20 = vector.broadcast %19 : vector<8x1xi32> to vector<8x128xi32>
    %21 = arith.cmpi eq, %18, %20 : vector<8x128xi32>
    %cst_9 = arith.constant 1.200000e+01 : f32
    %cst_10 = arith.constant 0.000000e+00 : f32
    %22 = vector.broadcast %cst_9 : f32 to vector<8x128xf32>
    %23 = vector.broadcast %cst_10 : f32 to vector<8x128xf32>
    %24 = arith.select %21, %22, %23 : vector<8x128xi1>, vector<8x128xf32>
    %cst_11 = arith.constant 3.000000e+01 : f32
    %25 = vector.broadcast %cst_11 : f32 to vector<8x1xf32>
    %26 = arith.mulf %25, %7 : vector<8x1xf32>
    %27 = vector.broadcast %26 : vector<8x1xf32> to vector<8x128xf32>
    %28 = vector.broadcast %13 : vector<1x128xf32> to vector<8x128xf32>
    %29 = arith.mulf %27, %28 : vector<8x128xf32>
    %30 = arith.mulf %14, %29 : vector<8x128xf32>
    %31 = arith.subf %30, %24 : vector<8x128xf32>
    %c0_12 = arith.constant 0 : index
    %c0_13 = arith.constant 0 : index
    %32 = vector.load %arg5[%c0_12, %c0_13] : memref<8x128xf32, #tpu.memory_space<vmem>>, vector<8x128xf32>
    tpu.vector_store %arg5[%c0_12, %c0_13], %31 {strides = array<i32>} : memref<8x128xf32, #tpu.memory_space<vmem>>, vector<8x128xf32>,
    return
  }
  func.func @transform_0(%arg0: i32, %arg1: i32) -> (i32, i32) {
    %c0_i32 = arith.constant 0 : i32
    %c0_i32_0 = arith.constant 0 : i32
    return %arg0, %c0_i32 : i32, i32
  }
  func.func @transform_1(%arg0: i32, %arg1: i32) -> (i32, i32) {
    %c0_i32 = arith.constant 0 : i32
    %c0_i32_0 = arith.constant 0 : i32
    return %c0_i32, %arg1 : i32, i32
  }
  func.func @transform_2(%arg0: i32, %arg1: i32) -> (i32, i32) {
    %c0_i32 = arith.constant 0 : i32
    %c0_i32_0 = arith.constant 0 : i32
    return %arg0, %c0_i32 : i32, i32
  }
  func.func @transform_3(%arg0: i32, %arg1: i32) -> (i32, i32) {
    %c0_i32 = arith.constant 0 : i32
    return %arg0, %arg1 : i32, i32
  }
}

</mosaic_0001>

<bundles_post_ra>
// kernel: tpu_custom_call.1
= control target key start
LH: loop header
LB: loop body
LE: loop exit
PB: predicated region body
PF: predicated region fallthrough
CT: control target
= control target key end

     0   :  { %8 = vsyncpa [#allocation3], 0  ;;  %s236_s0 = inlined_call_operand.vmem [shape: f32[8,32], index: 0, kind: input, shape index: {}]   ;;  %s237_s1 = inlined_call_operand.hbm [shape: f32[32,128], index: 1, kind: input, shape index: {}]   ;;  %s238_s2 = inlined_call_operand.vmem [shape: s32[8,1], index: 2, kind: input, shape index: {}]   ;;  %s239_s3 = inlined_call_operand.hbm [shape: f32[8,128], index: 3, kind: output, shape index: {}]  }
   0x1   :  { %9 = vsyncpa [#allocation4], 0  ;;  %s16_s14 = sshll.u32 %s237_s1, 4  ;;  %s196_s15 = smov [#allocation2]   ;;  %s17_s14 = int_to_ptr.hbm [resolvable:$true] %s16_s14 }
   0x2   :  { %s18_s16 = sshll.u32 %s196_s15, 4  ;;  %s197_s17 = smov 128   ;;  %s19_s16 = int_to_ptr.vmem [resolvable:$true] %s18_s16 }
   0x3   :  { %s198_s18 = smov 8  }
   0x4   :  { %24 = dma.hbm_to_vmem [thread:$0]  %s17_s14, 512, %s19_s16, [#allocation3], %s197_s17, %s197_s17, %s198_s18  }
   0x5   :  { %192 = dma.done.wait [#allocation3], 512  }
   0x6   :  { %193 = vsyncadd [#allocation3], 4294966784  ;;  %v199_v0 = vmov 0   ;;  %v31_v1 = vld [vmem:[%s236_s0] sm:$0xff]  ;;  %vm37_vm0 = vcmask 261120   ;;  %v35_v2 = vld [vmem:[#allocation2 + $0x18] sm:$0xff]  ;;  %v100_v33 = vlaneseq }
   0x7   :  { %139 = vset.pattern.permute.xlu0 %v199_v0  ;;  %v34_v3 = vld [vmem:[#allocation2 + $0x10] sm:$0xff]  ;;  %v36_v4 = vmul.f32 %v31_v1, %v31_v1  ;;  %91 = vmatpush.msra.mxu0 %v35_v2  ;;  %v33_v5 = vld [vmem:[#allocation2 + $0x8] sm:$0xff]  ;;  %v32_v6 = vld [vmem:[#allocation2] sm:$0xff]  ;;  %v55_v11 = vmul.f32 %v35_v2, %v35_v2  ;;  %v200_v45 = vmov 0.0   ;;  %s122_s24 = sshll.u32 %s239_s3, 4  ;;  %s123_s24 = int_to_ptr.hbm [resolvable:$true] %s122_s24 }
   0x8   :  { %v54_v7 = vmul.f32 %v34_v3, %v34_v3  ;;  %v53_v8 = vmul.f32 %v33_v5, %v33_v5  ;;  %v52_v9 = vmul.f32 %v32_v6, %v32_v6  ;;  %v104_v15 = vld [vmem:[%s238_s2] sm:$0xff]  ;;  %v101_v37 = vand.u32 127, %v100_v33  ;;  %s201_s2 = smov [#allocation5]  }
   0x9   :  { %v38_v10 = vsel %vm37_vm0, %v36_v4, 0.0  ;;  %92 = vmatpush.msra.mxu0 %v34_v3  ;;  %s120_s21 = sshll.u32 %s201_s2, 4  ;;  %s121_s21 = int_to_ptr.vmem [resolvable:$true] %s120_s21 }
   0xa   :  { %39 = vadd.xlane.f32.xlu0 %v38_v10  ;;  %v56_v12 = vadd.f32 %v53_v8, %v52_v9 }
   0xb   :  { %93 = vmatpush.msra.mxu0 %v33_v5 }
   0xc   :  { %v57_v13 = vadd.f32 %v56_v12, %v54_v7 }
   0xd   :  { %94 = vmatpush.msra.mxu0 %v32_v6 }
   0xe   :  { %v58_v14 = vadd.f32 %v57_v13, %v55_v11  ;;  %132 = vmatmul.msk.f32.vlgmr.msra.gmra.mxu0 %vm37_vm0, %v31_v1 }
  0x10   :  { %v59_v16 = vrot.slane %v58_v14, 4 }
  0x12   :  { %v60_v17 = vadd.f32 %v59_v16, %v58_v14 }
  0x14   :  { %v61_v18 = vrot.slane %v60_v17, 2 }
  0x16   :  { %v62_v19 = vadd.f32 %v61_v18, %v60_v17 }
  0x18   :  { %v63_v20 = vrot.slane %v62_v19, 1 }
  0x1a   :  { %v64_v21 = vadd.f32 %v63_v20, %v62_v19 }
  0x1c   :  { %v65_v22 = vmax.f32 %v64_v21, 1e-24 }
  0x1e   :  { %106 = vperm.xlu0 %139, %v104_v15   ;;  %140 = vrsqrt.f32 %v65_v22  ;;  %vm72_vm1 = vweird.f32 %v65_v22 }
  0x24   :  { %v141_v23 = vpop.eup %140 }
  0x25   :  { %v67_v25 = vmul.f32 %v141_v23, %v65_v22  ;;  %vm73_vm2 = vweird.f32 %v141_v23 }
  0x26   :  { %vm74_vm4 = vmor %vm72_vm1, %vm73_vm2 }
  0x27   :  { %v68_v27 = vmul.f32 %v141_v23, %v67_v25 }
  0x29   :  { %v69_v28 = vmul.f32 0.5, %v68_v27 }
  0x2b   :  { %v70_v32 = vsub.f32 1.5, %v69_v28 }
  0x2d   :  { %v71_v36 = vmul.f32 %v141_v23, %v70_v32 }
  0x2f   :  { %v75_v41 = vsel %vm74_vm4, %v141_v23, %v71_v36 }
  0x7d   :  { %v40_v24 = vpop.xlane.xlu0 %39 }
  0x7e   :  { %v41_v26 = vmax.f32 %v40_v24, 1e-24 }
  0x80   :  { %142 = vrsqrt.f32 %v41_v26  ;;  %vm48_vm5 = vweird.f32 %v41_v26 }
  0x86   :  { %v143_v29 = vpop.eup %142 }
  0x87   :  { %v43_v30 = vmul.f32 %v143_v29, %v41_v26  ;;  %vm49_vm3 = vweird.f32 %v143_v29 }
  0x88   :  { %vm50_vm6 = vmor %vm48_vm5, %vm49_vm3 }
  0x89   :  { %v44_v31 = vmul.f32 %v143_v29, %v43_v30 }
  0x8b   :  { %v45_v34 = vmul.f32 0.5, %v44_v31  ;;  %v96_v43 = vpop.f32.mrf.mxu0 }
  0x8d   :  { %v46_v35 = vsub.f32 1.5, %v45_v34 }
  0x8f   :  { %v47_v38 = vmul.f32 %v143_v29, %v46_v35 }
  0x90   :  { %v107_v39 = vpop.permute.xlu0 %106 }
  0x91   :  { %v51_v40 = vsel %vm50_vm6, %v143_v29, %v47_v38  ;;  %vm108_vm7 = vcmp.eq.s32.totalorder %v101_v37, %v107_v39 }
  0x92   :  { %v110_v42 = vmul.f32 30.0, %v51_v40  ;;  %v109_v46 = vsel %vm108_vm7, 12.0, %v200_v45 }
  0x94   :  { %v111_v44 = vmul.f32 %v110_v42, %v75_v41 }
  0x96   :  { %v112_v47 = vmul.f32 %v111_v44, %v96_v43 }
  0x98   :  { %v113_v48 = vsub.f32 %v112_v47, %v109_v46 }
  0x9a   :  { %114 = vst [vmem:[#allocation5] sm:$0xff] %v113_v48 }
  0x9b   :  { %125 = dma.vmem_to_hbm [thread:$0]  %s121_s21, 128, %s123_s24, [#allocation4]  }
  0x9c   :  { %194 = dma.done.wait [#allocation4], 128  }
  0x9d   :  { %195 = vsyncadd [#allocation4], 4294967168 }
  0x9e   :  { %130 = vsyncpa [#allocation3], 1 }
  0x9f   :  { %131 = vsyncpa [#allocation4], 1 }

</bundles_post_ra>
